<compile_context>
chip_gen: v7x
topology: tpu7x:2x2x1
jax: 0.10.0
libtpu: 0.0.40
codegen_flags: <defaults>
</compile_context>

<pallas_src>
import functools

import jax
import jax.numpy as jnp
import numpy as np
from jax import lax
from jax.experimental import pallas as pl
from jax.experimental.pallas import tpu as pltpu


_SMALL_K_MAX = 8                       # VPU outer-product path when K <= this
_FULLK_VMEM_BUDGET = 24 * 1024 * 1024  # full-K path if its footprint fits this


def _round_up(x, m):
    return ((x + m - 1) // m) * m


def _pick_tile(dim, max_tile, granule, max_waste_frac=0.125):
    """Largest tile <= max_tile (multiple of `granule`) with bounded padding."""
    dim_g = _round_up(dim, granule)
    if dim_g <= max_tile:
        return dim_g
    allowed = max(granule, int(dim_g * max_waste_frac))
    t = (max_tile // granule) * granule
    while t >= granule:
        if _round_up(dim_g, t) - dim_g <= allowed:
            return t
        t -= granule
    return granule


def _vmem_limit(footprint_bytes):
    # Explicit scoped-VMEM cap: at least the 32 MiB default, at most 48 MiB so
    # the same sizing is also safe on v7x (64 MiB physical VMEM).
    return int(min(48 * 1024 * 1024, max(32 * 1024 * 1024, 2 * footprint_bytes)))


# ----------------------------------------------------------------------------
# One-time parameter preparation (amortized across forward calls).
# ----------------------------------------------------------------------------
def prepare_linear_params(weight, bias, *, compute_dtype=None,
                          max_tn=512, max_tk=1024):
    """weight: (N, K) PyTorch layout, bias: (N,).

    Transposes to (K, N), optionally casts, and pads once so the per-call hot
    path never re-reads/re-writes the weight in HBM.
    """
    n, k = weight.shape
    compute_dtype = jnp.dtype(compute_dtype if compute_dtype is not None
                              else weight.dtype)
    if k <= _SMALL_K_MAX:
        tk, k_pad = k, k
        tn = _pick_tile(n, 1024, 128)          # lane-dense output tiles
    else:
        tk = _pick_tile(k, max_tk, 128)
        k_pad = _round_up(k, tk)
        tn = _pick_tile(n, max_tn, 128)
    n_pad = _round_up(n, tn)
    wt = jnp.pad(weight.astype(compute_dtype).T,
                 ((0, k_pad - k), (0, n_pad - n)))            # (K_pad, N_pad)
    b = jnp.pad(bias.astype(jnp.float32), (0, n_pad - n)).reshape(1, n_pad)
    return dict(wt=wt, b=b, n=n, k=k, tn=tn, tk=tk,
                n_pad=n_pad, k_pad=k_pad, compute_dtype=compute_dtype)


# ----------------------------------------------------------------------------
# Small-K (e.g. in_features == 1) VPU path: o = sum_k x[:, k] * w[k, :] + b
# ----------------------------------------------------------------------------
def _small_k_kernel(x_ref, wt_ref, b_ref, o_ref):
    # x_ref: (tm, K), wt_ref: (K, tn), b_ref: (1, tn) f32, o_ref: (tm, tn)
    k_dim = x_ref.shape[1]
    x = x_ref[...].astype(jnp.float32)
    wt = wt_ref[...].astype(jnp.float32)
    acc = x[:, 0:1] * wt[0:1, :]          # (tm,1)*(1,tn) -> (tm,tn) on the VPU
    for kk in range(1, k_dim):            # K tiny & static -> unrolled
        acc = acc + x[:, kk:kk + 1] * wt[kk:kk + 1, :]
    o_ref[...] = (acc + b_ref[...]).astype(o_ref.dtype)


def _small_k_forward(x2d, params, out_dtype):
    m, k = x2d.shape
    n, n_pad, tn = params["n"], params["n_pad"], params["tn"]
    tm = _pick_tile(m, 1024, 8)
    m_pad = _round_up(m, tm)
    xp = jnp.pad(x2d, ((0, m_pad - m), (0, 0)))
    out = pl.pallas_call(
        _small_k_kernel,
        out_shape=jax.ShapeDtypeStruct((m_pad, n_pad), out_dtype),
        grid=(m_pad // tm, n_pad // tn),
        in_specs=[
            pl.BlockSpec((tm, k), lambda i, j: (i, 0)),
            pl.BlockSpec((k, tn), lambda i, j: (0, j)),
            pl.BlockSpec((1, tn), lambda i, j: (0, j)),
        ],
        out_specs=pl.BlockSpec((tm, tn), lambda i, j: (i, j)),
        compiler_params=pltpu.CompilerParams(
            dimension_semantics=("parallel", "parallel")),
    )(xp, params["wt"], params["b"])
    return out[:m, :n]


# ----------------------------------------------------------------------------
# Full-K MXU path: W streamed from HBM exactly once (N axis outermost).
# ----------------------------------------------------------------------------
def _fullk_kernel(x_ref, wt_ref, b_ref, o_ref, *, precision):
    acc = jnp.dot(x_ref[...], wt_ref[...],
                  preferred_element_type=jnp.float32, precision=precision)
    o_ref[...] = (acc + b_ref[...]).astype(o_ref.dtype)


def _fullk_forward(x2d, params, out_dtype, precision):
    m, k = x2d.shape
    n, k_pad, n_pad, tn = params["n"], params["k_pad"], params["n_pad"], params["tn"]
    wt, b = params["wt"], params["b"]
    cdt = params["compute_dtype"]
    tm = _pick_tile(m, 512, 8)
    m_pad = _round_up(m, tm)
    gi, gj = m_pad // tm, n_pad // tn
    # v7x has 2 TensorCores: keep >= 2 blocks on a parallel axis when possible.
    if gi == 1 and gj == 1 and tn % 256 == 0:
        tn //= 2
        gj = n_pad // tn
    xp = jnp.pad(x2d.astype(cdt), ((0, m_pad - m), (0, k_pad - k)))
    isz = jnp.dtype(cdt).itemsize
    out_isz = jnp.dtype(out_dtype).itemsize
    footprint = (2 * (tm * k_pad + k_pad * tn) * isz
                 + 2 * tm * tn * out_isz + 2 * tn * 4)
    out = pl.pallas_call(
        functools.partial(_fullk_kernel, precision=precision),
        out_shape=jax.ShapeDtypeStruct((m_pad, n_pad), out_dtype),
        grid=(gj, gi),   # N outermost -> each W slab DMA'd from HBM only once
        in_specs=[
            pl.BlockSpec((tm, k_pad), lambda j, i: (i, 0)),
            pl.BlockSpec((k_pad, tn), lambda j, i: (0, j)),
            pl.BlockSpec((1, tn), lambda j, i: (0, j)),
        ],
        out_specs=pl.BlockSpec((tm, tn), lambda j, i: (i, j)),
        compiler_params=pltpu.CompilerParams(
            dimension_semantics=("parallel", "parallel"),
            vmem_limit_bytes=_vmem_limit(footprint)),
        cost_estimate=pl.CostEstimate(
            flops=2 * m_pad * n_pad * k_pad,
            transcendentals=0,
            bytes_accessed=(xp.size * isz * gj       # x re-read per N block
                            + wt.size * isz          # W streamed exactly once
                            + b.size * 4
                            + m_pad * n_pad * out_isz)),
    )(xp, wt, b)
    return out[:m, :n]


# ----------------------------------------------------------------------------
# Large-K MXU path: (i, j, k) grid with f32 VMEM accumulator.
# ----------------------------------------------------------------------------
def _matmul_bias_kernel(x_ref, wt_ref, b_ref, o_ref, acc_ref, *, precision):
    kk = pl.program_id(2)

    @pl.when(kk == 0)
    def _init():
        acc_ref[...] = jnp.zeros_like(acc_ref)

    acc_ref[...] += jnp.dot(x_ref[...], wt_ref[...],
                            preferred_element_type=jnp.float32,
                            precision=precision)

    @pl.when(kk == pl.num_programs(2) - 1)
    def _finalize():
        o_ref[...] = (acc_ref[...] + b_ref[...]).astype(o_ref.dtype)


def _tiled_forward(x2d, params, out_dtype, precision):
    m, k = x2d.shape
    n, k_pad, n_pad = params["n"], params["k_pad"], params["n_pad"]
    tn, tk = params["tn"], params["tk"]
    wt, b = params["wt"], params["b"]
    cdt = params["compute_dtype"]
    tm = _pick_tile(m, 512, 8)
    m_pad = _round_up(m, tm)
    gi, gj, gk = m_pad // tm, n_pad // tn, k_pad // tk
    xp = jnp.pad(x2d.astype(cdt), ((0, m_pad - m), (0, k_pad - k)))
    isz = jnp.dtype(cdt).itemsize
    out_isz = jnp.dtype(out_dtype).itemsize
    footprint = (2 * (tm * tk + tk * tn) * isz
                 + 2 * tm * tn * out_isz + tm * tn * 4 + 2 * tn * 4)
    out = pl.pallas_call(
        functools.partial(_matmul_bias_kernel, precision=precision),
        out_shape=jax.ShapeDtypeStruct((m_pad, n_pad), out_dtype),
        grid_spec=pltpu.PrefetchScalarGridSpec(
            num_scalar_prefetch=0,
            grid=(gi, gj, gk),
            in_specs=[
                pl.BlockSpec((tm, tk), lambda i, j, kk: (i, kk)),
                pl.BlockSpec((tk, tn), lambda i, j, kk: (kk, j)),
                pl.BlockSpec((1, tn), lambda i, j, kk: (0, j)),
            ],
            out_specs=pl.BlockSpec((tm, tn), lambda i, j, kk: (i, j)),
            scratch_shapes=[pltpu.VMEM((tm, tn), jnp.float32)],
        ),
        compiler_params=pltpu.CompilerParams(
            dimension_semantics=("parallel", "parallel", "arbitrary"),
            vmem_limit_bytes=_vmem_limit(footprint)),
        cost_estimate=pl.CostEstimate(
            flops=2 * m_pad * n_pad * k_pad,
            transcendentals=0,
            bytes_accessed=(xp.size * isz * gj       # x re-read per N block
                            + wt.size * isz * gi     # W re-read per M block
                            + b.size * 4
                            + m_pad * n_pad * out_isz)),
    )(xp, wt, b)
    return out[:m, :n]


# ----------------------------------------------------------------------------
# Forward pass (hot path) + convenience wrapper.
# ----------------------------------------------------------------------------
def linear_forward(x, params, *, fullk_budget_bytes=None):
    """y = x @ W^T + b using parameters from prepare_linear_params()."""
    n, k = params["n"], params["k"]
    lead = x.shape[:-1]
    m = 1
    for d in lead:
        m *= d
    x2d = x.reshape(m, k)
    out_dtype = x.dtype

    if k <= _SMALL_K_MAX:
        out = _small_k_forward(x2d, params, out_dtype)
    else:
        cdt = params["compute_dtype"]
        # f32 fidelity: fp32 contract precision on the MXU (no silent bf16).
        precision = (lax.Precision.HIGHEST
                     if jnp.dtype(cdt) == jnp.float32 else None)
        budget = (_FULLK_VMEM_BUDGET if fullk_budget_bytes is None
                  else fullk_budget_bytes)
        tm = _pick_tile(m, 512, 8)
        isz = jnp.dtype(cdt).itemsize
        out_isz = jnp.dtype(out_dtype).itemsize
        k_pad, tn = params["k_pad"], params["tn"]
        fullk_bytes = (2 * (tm * k_pad + k_pad * tn) * isz
                       + 2 * tm * tn * out_isz + 2 * tn * 4)
        if fullk_bytes <= budget:
            out = _fullk_forward(x2d, params, out_dtype, precision)
        else:
            out = _tiled_forward(x2d, params, out_dtype, precision)
    return out.reshape(*lead, n)


def my_transform_forward(x, weight, bias, *, compute_dtype=None):
    """Convenience one-shot API (Pallas equivalent of MyTransform.forward).

    In a real model call prepare_linear_params() once at init and
    linear_forward() per step so the weight transpose/cast/pad is amortized.
    """
    params = prepare_linear_params(weight, bias, compute_dtype=compute_dtype)
    return linear_forward(x, params)


if __name__ == "__main__":
    key = jax.random.PRNGKey(0)
    batch, seq = 2, 8

    # ---- Test 1: the module's actual configuration (in_features=1 -> 128) ----
    input_size, output_size = 1, 128
    kx, kw, kb, key = jax.random.split(key, 4)
    bound = 1.0 / (input_size ** 0.5)
    w1 = jax.random.uniform(kw, (output_size, input_size), jnp.float32, -bound, bound)
    b1 = jax.random.uniform(kb, (output_size,), jnp.float32, -bound, bound)
    x1 = jax.random.normal(kx, (batch, seq, input_size), jnp.float32)

    p1 = prepare_linear_params(w1, b1)          # one-time, amortized prep
    y1 = linear_forward(x1, p1)
    jax.block_until_ready(y1)
    ref1 = (np.asarray(x1, np.float64) @ np.asarray(w1, np.float64).T
            + np.asarray(b1, np.float64))
    assert y1.shape == (batch, seq, output_size)
    assert np.allclose(np.asarray(y1, np.float64), ref1, atol=1e-5, rtol=1e-5)

    # ---- Test 2: full-K MXU path (weight streamed once), exact-f32 precision --
    k2, n2 = 160, 192
    kx, kw, kb, key = jax.random.split(key, 4)
    bound2 = 1.0 / (k2 ** 0.5)
    w2 = jax.random.uniform(kw, (n2, k2), jnp.float32, -bound2, bound2)
    b2 = jax.random.uniform(kb, (n2,), jnp.float32, -bound2, bound2)
    x2 = jax.random.normal(kx, (batch, seq, k2), jnp.float32)
    y2 = my_transform_forward(x2, w2, b2)
    jax.block_until_ready(y2)
    ref2 = (np.asarray(x2, np.float64) @ np.asarray(w2, np.float64).T
            + np.asarray(b2, np.float64))
    assert y2.shape == (batch, seq, n2)
    assert np.allclose(np.asarray(y2, np.float64), ref2, atol=1e-3, rtol=1e-3)

    # ---- Test 3: large-K accumulator path (forced via a tiny full-K budget) ---
    k3, n3 = 1536, 384
    kx, kw, kb, key = jax.random.split(key, 4)
    bound3 = 1.0 / (k3 ** 0.5)
    w3 = jax.random.uniform(kw, (n3, k3), jnp.float32, -bound3, bound3)
    b3 = jax.random.uniform(kb, (n3,), jnp.float32, -bound3, bound3)
    x3 = jax.random.normal(kx, (batch, seq, k3), jnp.float32)
    p3 = prepare_linear_params(w3, b3)
    y3 = linear_forward(x3, p3, fullk_budget_bytes=0)   # exercise (i,j,k) grid
    jax.block_until_ready(y3)
    ref3 = (np.asarray(x3, np.float64) @ np.asarray(w3, np.float64).T
            + np.asarray(b3, np.float64))
    assert y3.shape == (batch, seq, n3)
    assert np.allclose(np.asarray(y3, np.float64), ref3, atol=1e-3, rtol=1e-3)

    print("KERNEL_OK")
</pallas_src>

<mosaic_0001>
module attributes {stable_mosaic.version = 11 : i64} {
  func.func @_small_k_kernel(%arg0: i32, %arg1: i32, %arg2: memref<16x1xf32, #tpu.memory_space<vmem>>, %arg3: memref<1x128xf32, #tpu.memory_space<vmem>>, %arg4: memref<1x128xf32, #tpu.memory_space<vmem>>, %arg5: memref<16x128xf32, #tpu.memory_space<vmem>>) attributes {dimension_semantics = [#tpu.dimension_semantics<parallel>, #tpu.dimension_semantics<parallel>], iteration_bounds = array<i64: 1, 1>, scalar_prefetch = 0 : i64, scratch_operands = 0 : i64, tpu.core_type = #tpu.core_type<tc>, window_params = [{transform_indices = @transform_0, window_bounds = array<i64: 16, 1>}, {transform_indices = @transform_1, window_bounds = array<i64: 1, 128>}, {transform_indices = @transform_2, window_bounds = array<i64: 1, 128>}, {transform_indices = @transform_3, window_bounds = array<i64: 16, 128>}]} {
    %c0 = arith.constant 0 : index
    %c0_0 = arith.constant 0 : index
    %0 = vector.load %arg2[%c0, %c0_0] : memref<16x1xf32, #tpu.memory_space<vmem>>, vector<16x1xf32>
    %c0_1 = arith.constant 0 : index
    %c0_2 = arith.constant 0 : index
    %1 = vector.load %arg3[%c0_1, %c0_2] : memref<1x128xf32, #tpu.memory_space<vmem>>, vector<1x128xf32>
    %2 = vector.broadcast %0 : vector<16x1xf32> to vector<16x128xf32>
    %3 = vector.broadcast %1 : vector<1x128xf32> to vector<16x128xf32>
    %4 = arith.mulf %2, %3 : vector<16x128xf32>
    %c0_3 = arith.constant 0 : index
    %c0_4 = arith.constant 0 : index
    %5 = vector.load %arg4[%c0_3, %c0_4] : memref<1x128xf32, #tpu.memory_space<vmem>>, vector<1x128xf32>
    %6 = vector.broadcast %5 : vector<1x128xf32> to vector<16x128xf32>
    %7 = arith.addf %4, %6 : vector<16x128xf32>
    %c0_5 = arith.constant 0 : index
    %c0_6 = arith.constant 0 : index
    %8 = vector.load %arg5[%c0_5, %c0_6] : memref<16x128xf32, #tpu.memory_space<vmem>>, vector<16x128xf32>
    tpu.vector_store %arg5[%c0_5, %c0_6], %7 {strides = array<i32>} : memref<16x128xf32, #tpu.memory_space<vmem>>, vector<16x128xf32>,
    return
  }
  func.func @transform_0(%arg0: i32, %arg1: i32) -> (i32, i32) {
    %c0_i32 = arith.constant 0 : i32
    %c0_i32_0 = arith.constant 0 : i32
    return %arg0, %c0_i32 : i32, i32
  }
  func.func @transform_1(%arg0: i32, %arg1: i32) -> (i32, i32) {
    %c0_i32 = arith.constant 0 : i32
    %c0_i32_0 = arith.constant 0 : i32
    return %c0_i32, %arg1 : i32, i32
  }
  func.func @transform_2(%arg0: i32, %arg1: i32) -> (i32, i32) {
    %c0_i32 = arith.constant 0 : i32
    %c0_i32_0 = arith.constant 0 : i32
    return %c0_i32, %arg1 : i32, i32
  }
  func.func @transform_3(%arg0: i32, %arg1: i32) -> (i32, i32) {
    %c0_i32 = arith.constant 0 : i32
    return %arg0, %arg1 : i32, i32
  }
}

</mosaic_0001>

<bundles_post_ra>
// kernel: tpu_custom_call.1
= control target key start
LH: loop header
LB: loop body
LE: loop exit
PB: predicated region body
PF: predicated region fallthrough
CT: control target
= control target key end

     0   :  { %v94_v1 = vmov 0   ;;  %s142_s0 = inlined_call_operand.vmem [shape: f32[16,1], index: 0, kind: input, shape index: {}]   ;;  %s143_s1 = inlined_call_operand.vmem [shape: f32[1,128], index: 1, kind: input, shape index: {}]   ;;  %s144_s2 = inlined_call_operand.vmem [shape: f32[1,128], index: 2, kind: input, shape index: {}]   ;;  %s145_s3 = inlined_call_operand.hbm [shape: f32[16,128], index: 3, kind: output, shape index: {}]  }
   0x1   :  { %v15_v0 = vld [vmem:[%s142_s0] sm:$0xff]  ;;  %69 = vset.pattern.permute.xlu0 %v94_v1 }
   0x2   :  { %8 = vsyncpa [#allocation3], 0  ;;  %20 = vperm.xlu0 %69, %v15_v0   ;;  %v16_v2 = vld [vmem:[%s142_s0 + $0x8] sm:$0xff]  ;;  %v63_v3 = vld [vmem:[%s143_s1] ss:$0 sm:$0xff]  ;;  %s95_s20 = smov [#allocation2]  }
   0x3   :  { %v64_v4 = vld [vmem:[%s144_s2] ss:$0 sm:$0xff]  ;;  %s52_s21 = sshll.u32 %s95_s20, 4  ;;  %s53_s21 = int_to_ptr.vmem [resolvable:$true] %s52_s21 }
   0x4   :  { %s70_s0 = scalar_lea.vmem %s53_s21, 256  ;;  %p75_p1 = scmp.lt.s32.totalorder %s53_s21, %s53_s21 }
   0x5   :  { %p71_p0 = scmp.ne.s32.totalorder %s53_s21, %s70_s0  ;;  %p76_p2 = scmp.lt.s32.totalorder %s70_s0, %s70_s0 }
   0x6   :  { %25 = vperm.xlu0 %69, %v16_v2  }
   0x7   :  { %p77_p3 = por %p76_p2, %p75_p1 }
   0x9   :  { %p78_p4 = pnand %p77_p3, %p71_p0 }
  0x81   :  { %v21_v5 = vpop.permute.xlu0 %20 }
  0x82   :  { %v34_v6 = vmul.f32 %v63_v3, %v21_v5 }
  0x84   :  { %v43_v7 = vadd.f32 %v64_v4, %v34_v6 }
  0x85   :  { %v26_v8 = vpop.permute.xlu0 %25 }
  0x86   :  { %45 = vst [vmem:[#allocation2] sm:$0xff] %v43_v7  ;;  %v35_v9 = vmul.f32 %v63_v3, %v26_v8 }
  0x88   :  { %v44_v10 = vadd.f32 %v64_v4, %v35_v9 }
  0x8a   :  { %46 = vst [vmem:[#allocation2 + $0x8] sm:$0xff] %v44_v10 }
  0x8b   :  { %81 = shalt.err (!%p78_p4)
}
  0x8c   :  { %s82_s22 = scalar_lea.hbm %s145_s3, 256 }
  0x8d   :  { %p83_p5 = scmp.ne.s32.totalorder %s145_s3, %s82_s22  ;;  %p86_p6 = scmp.lt.u32.totalorder %s82_s22, %s145_s3 }
  0x8f   :  { %p88_p7 = pnand %p86_p6, %p83_p5 }
  0x91   :  { %91 = shalt.err (!%p88_p7)
}
  0x92   :  { %s96_s27 = smov 128   ;;  %s97_s28 = smov 8  }
  0x93   :  { %58 = dma.vmem_to_hbm [thread:$0]  %s53_s21, 256, %s145_s3, [#allocation3], %s96_s27, %s96_s27, %s97_s28  }
  0x94   :  { %92 = dma.done.wait [#allocation3], 256  }
  0x95   :  { %93 = vsyncadd [#allocation3], 4294967040 }
  0x96   :  { %62 = vsyncpa [#allocation3], 1 }

</bundles_post_ra>
